<compile_context>
chip_gen: v7x
topology: tpu7x:2x2x1
jax: 0.10.0
libtpu: 0.0.40
codegen_flags: <defaults>
</compile_context>

<pallas_src>
import functools
import math

import jax
import jax.numpy as jnp
from jax import lax
from jax.experimental import pallas as pl
from jax.experimental.pallas import tpu as pltpu

LANE = 128                               # lane-dense padding target
VMEM_LIMIT = 32 * 1024 * 1024            # safe on v5e/v6e (128MiB) and v7x (64MiB)

PARAM_NAMES = ["wqkv", "bqkv", "wo", "bo",
               "g1", "be1", "w1", "b1", "w2", "b2", "g2", "be2"]


def _round_up(x, m):
    return ((x + m - 1) // m) * m


def _pick_batch_tile(B, max_tile=8):
    """Largest divisor of B (<= max_tile) that still leaves >= 2 grid steps."""
    for cand in (8, 4, 2):
        if cand <= max_tile and B % cand == 0 and B // cand >= 2:
            return cand
    return 1


def _pad2d(a, rows, cols):
    r, c = a.shape
    return jnp.pad(a, ((0, rows - r), (0, cols - c)))


# ----------------------------------------------------------------------------
# Kernel 1: patch embedding (= patches @ W, folded BN, ReLU) + PE add + cls row
# One fused kernel writes the (bbp, S, Dp) transformer input tile directly.
# ----------------------------------------------------------------------------
def patch_embed_kernel(p_ref, w_ref, scale_ref, bias_ref, pe_ref, cls_ref, o_ref):
    bbp, Np, K = p_ref.shape
    Dp = w_ref.shape[1]
    x = p_ref[...].reshape(bbp * Np, K)                               # bf16
    acc = jnp.dot(x, w_ref[...], preferred_element_type=jnp.float32)  # (bbp*Np, Dp)
    y = jnp.maximum(acc * scale_ref[...] + bias_ref[...], 0.0)        # BN + ReLU
    y = y.reshape(bbp, Np, Dp) + pe_ref[...][None]                    # + pos. enc.
    cls_rows = jnp.broadcast_to(cls_ref[...].reshape(1, 1, Dp), (bbp, 1, Dp))
    out = jnp.concatenate([cls_rows, y], axis=1)                      # (bbp, S, Dp) f32
    o_ref[...] = out.astype(o_ref.dtype)                              # one full-tile store


def patch_embed(patches, w, bn_scale, bn_bias, pe_patches, cls_row):
    B, Np, K = patches.shape
    Dp = w.shape[1]
    S = Np + 1
    bbp = _pick_batch_tile(B)
    return pl.pallas_call(
        patch_embed_kernel,
        out_shape=jax.ShapeDtypeStruct((B, S, Dp), jnp.bfloat16),
        grid=(B // bbp,),
        in_specs=[
            pl.BlockSpec((bbp, Np, K), lambda b: (b, 0, 0)),
            pl.BlockSpec((K, Dp), lambda b: (0, 0)),
            pl.BlockSpec((1, Dp), lambda b: (0, 0)),
            pl.BlockSpec((1, Dp), lambda b: (0, 0)),
            pl.BlockSpec((Np, Dp), lambda b: (0, 0)),
            pl.BlockSpec((1, Dp), lambda b: (0, 0)),
        ],
        out_specs=pl.BlockSpec((bbp, S, Dp), lambda b: (b, 0, 0)),
        compiler_params=pltpu.CompilerParams(
            dimension_semantics=("parallel",),
            vmem_limit_bytes=VMEM_LIMIT),
    )(patches, w, bn_scale, bn_bias, pe_patches, cls_row)


# ----------------------------------------------------------------------------
# Kernel 2: one transformer block (MHA + add&norm + FFN + add&norm).
# bf16 activations at the boundary, f32 accumulation / elementwise inside.
# ----------------------------------------------------------------------------
def _layer_norm(h, gamma, beta, lane_mask, inv_d):
    # LN over the *real* D lanes; padded lanes are zero on input and stay zero.
    mu = jnp.sum(h, axis=-1, keepdims=True) * inv_d
    d = (h - mu) * lane_mask
    var = jnp.sum(d * d, axis=-1, keepdims=True) * inv_d
    return d * lax.rsqrt(var + 1e-5) * gamma + beta


def transformer_kernel(x_ref, wqkv, bqkv, wo, bo, g1, be1, w1, b1, w2, b2,
                       g2, be2, o_ref, *, n_head, d_real):
    bb, S, Dp = x_ref.shape
    hdp = Dp // n_head
    inv_d = 1.0 / float(d_real)

    x_in = x_ref[...].reshape(bb * S, Dp)
    x_bf = x_in.astype(jnp.bfloat16)
    x_f32 = x_in.astype(jnp.float32)
    lane_mask = (lax.broadcasted_iota(jnp.int32, (1, Dp), 1) < d_real
                 ).astype(jnp.float32)

    # Fused QKV projection: one 2-D MXU contraction (no weight broadcast).
    qkv = jnp.dot(x_bf, wqkv[...], preferred_element_type=jnp.float32)
    qkv = (qkv + bqkv[...]).reshape(bb, S, 3 * Dp)

    # Multi-head attention. The 1/sqrt(hd) scale is folded into the Q weights;
    # wo is folded into the per-head loop (f32 accumulation), so no lane-axis
    # concat of head outputs is needed. Head dim is lane-padded (hd -> hdp).
    o_acc = jnp.zeros((bb * S, Dp), jnp.float32)
    for h in range(n_head):
        qh = qkv[:, :, h * hdp:(h + 1) * hdp]
        kh = qkv[:, :, Dp + h * hdp:Dp + (h + 1) * hdp]
        vh = qkv[:, :, 2 * Dp + h * hdp:2 * Dp + (h + 1) * hdp]
        s = jnp.einsum('bqd,bkd->bqk', qh.astype(jnp.bfloat16),
                       kh.astype(jnp.bfloat16),
                       preferred_element_type=jnp.float32)            # (bb, S, S)
        s = s - jnp.max(s, axis=-1, keepdims=True)
        p = jnp.exp(s)
        p = p * pl.reciprocal(jnp.sum(p, axis=-1, keepdims=True), approx=True)
        ctx = jnp.einsum('bqk,bkd->bqd', p.astype(jnp.bfloat16),
                         vh.astype(jnp.bfloat16),
                         preferred_element_type=jnp.float32)          # (bb, S, hdp)
        o_acc = o_acc + jnp.dot(
            ctx.reshape(bb * S, hdp).astype(jnp.bfloat16),
            wo[h * hdp:(h + 1) * hdp, :],
            preferred_element_type=jnp.float32)
    attn = o_acc + bo[...]                                            # (bb*S, Dp)

    # residual + LayerNorm 1 (f32 elementwise)
    h1 = x_f32 + attn
    h1n = _layer_norm(h1, g1[...], be1[...], lane_mask, inv_d)

    # FFN (D -> E -> D) with GELU
    f = jnp.dot(h1n.astype(jnp.bfloat16), w1[...],
                preferred_element_type=jnp.float32) + b1[...]
    # TODO(synk): PyTorch nn.GELU defaults to exact erf; tanh approximation used.
    f = jax.nn.gelu(f, approximate=True)
    f2 = jnp.dot(f.astype(jnp.bfloat16), w2[...],
                 preferred_element_type=jnp.float32) + b2[...]

    # residual + LayerNorm 2
    h2 = h1n + f2
    out = _layer_norm(h2, g2[...], be2[...], lane_mask, inv_d)

    o_ref[...] = out.reshape(bb, S, Dp).astype(o_ref.dtype)


def transformer_block_apply(x, params, n_head, d_real):
    B, S, Dp = x.shape
    bb = _pick_batch_tile(B)
    args = [params[n] for n in PARAM_NAMES]
    in_specs = [pl.BlockSpec((bb, S, Dp), lambda b: (b, 0, 0))]
    # Weight blocks use a constant index_map -> Pallas keeps them VMEM-resident
    # across grid steps (no per-step re-DMA).
    for a in args:
        in_specs.append(pl.BlockSpec(a.shape, lambda b: (0, 0)))
    return pl.pallas_call(
        functools.partial(transformer_kernel, n_head=n_head, d_real=d_real),
        out_shape=jax.ShapeDtypeStruct((B, S, Dp), jnp.bfloat16),
        grid=(B // bb,),
        in_specs=in_specs,
        out_specs=pl.BlockSpec((bb, S, Dp), lambda b: (b, 0, 0)),
        compiler_params=pltpu.CompilerParams(
            dimension_semantics=("parallel",),
            vmem_limit_bytes=VMEM_LIMIT),
    )(x, *args)


# ----------------------------------------------------------------------------
# Plain-JAX glue + parameter construction (with lane padding baked in)
# ----------------------------------------------------------------------------
def positional_encoding(seq_len, d):
    pos = jnp.arange(seq_len, dtype=jnp.float32)[:, None]
    i = jnp.arange(d, dtype=jnp.float32)[None, :]
    angle = pos / jnp.power(10000.0, (2.0 * jnp.floor(i / 2.0)) / d)
    pe = jnp.where(jnp.arange(d)[None, :] % 2 == 0, jnp.sin(angle), jnp.cos(angle))
    return pe.astype(jnp.float32)                                     # (seq_len, d)


def init_params(key, in_ch, D, n_head, n_expansion, n_layer, P):
    Dp = _round_up(D, LANE)
    E = D * n_expansion
    Ep = _round_up(E, LANE)
    hd = D // n_head
    hdp = Dp // n_head
    K = in_ch * P * P

    keys = iter(jax.random.split(key, 8 + 12 * n_layer))

    def rnd(shape, scale=0.02):
        return (scale * jax.random.normal(next(keys), shape)).astype(jnp.float32)

    def head_cols(w):            # (D, D) -> (Dp, Dp); head-blocked output columns
        wr = jnp.pad(w.reshape(D, n_head, hd),
                     ((0, Dp - D), (0, 0), (0, hdp - hd)))
        return wr.reshape(Dp, Dp)

    def head_bias(b):            # (D,) -> (1, Dp); head-blocked
        br = jnp.pad(b.reshape(n_head, hd), ((0, 0), (0, hdp - hd)))
        return br.reshape(1, Dp)

    def head_rows(w):            # (D, D) -> (Dp, Dp); head-blocked input rows
        wr = jnp.pad(w.reshape(n_head, hd, D),
                     ((0, 0), (0, hdp - hd), (0, Dp - D)))
        return wr.reshape(Dp, Dp)

    # ---- patch embedding: Conv2d(k=s=32,p=0) + BatchNorm(eval) + ReLU, folded ----
    conv_w = rnd((D, K))
    conv_b = rnd((D,))
    bn_gamma = 1.0 + rnd((D,))
    bn_beta = rnd((D,))
    bn_mean = jnp.zeros((D,), jnp.float32)       # eval-mode running stats
    bn_var = jnp.ones((D,), jnp.float32)
    bn_scale = bn_gamma / jnp.sqrt(bn_var + 1e-5)
    bn_bias = (conv_b - bn_mean) * bn_scale + bn_beta

    cls_token = rnd((1, D), scale=1.0)

    layers = []
    inv_sqrt_hd = 1.0 / math.sqrt(hd)
    for _ in range(n_layer):
        wq, wk, wv = rnd((D, D)), rnd((D, D)), rnd((D, D))
        bq, bk, bv = rnd((D,)), rnd((D,)), rnd((D,))
        wq = wq * inv_sqrt_hd                    # fold attention scale into Q
        bq = bq * inv_sqrt_hd
        wqkv = jnp.concatenate([head_cols(wq), head_cols(wk), head_cols(wv)],
                               axis=1)                                # (Dp, 3Dp)
        bqkv = jnp.concatenate([head_bias(bq), head_bias(bk), head_bias(bv)],
                               axis=1)                                # (1, 3Dp)
        layers.append({
            "wqkv": wqkv.astype(jnp.bfloat16),
            "bqkv": bqkv,
            "wo": head_rows(rnd((D, D))).astype(jnp.bfloat16),
            "bo": _pad2d(rnd((1, D)), 1, Dp),
            "g1": _pad2d(jnp.ones((1, D), jnp.float32), 1, Dp),
            "be1": jnp.zeros((1, Dp), jnp.float32),
            "w1": _pad2d(rnd((D, E)), Dp, Ep).astype(jnp.bfloat16),
            "b1": _pad2d(rnd((1, E)), 1, Ep),
            "w2": _pad2d(rnd((E, D)), Ep, Dp).astype(jnp.bfloat16),
            "b2": _pad2d(rnd((1, D)), 1, Dp),
            "g2": _pad2d(jnp.ones((1, D), jnp.float32), 1, Dp),
            "be2": jnp.zeros((1, Dp), jnp.float32),
        })
    return {
        "conv_w": _pad2d(conv_w.T, K, Dp).astype(jnp.bfloat16),       # (K, Dp)
        "bn_scale": _pad2d(bn_scale.reshape(1, D), 1, Dp),
        "bn_bias": _pad2d(bn_bias.reshape(1, D), 1, Dp),
        "cls_token": _pad2d(cls_token, 1, Dp),
        "d_real": D,
        "d_pad": Dp,
        "layers": layers,
    }


def vit_forward(x_nchw, params, *, n_head, patch=32):
    B, C, H, W = x_nchw.shape
    D = params["d_real"]
    Dp = params["d_pad"]

    # Non-overlapping patch extraction (Conv2d kernel==stride, padding 0).
    Hp, Wp = H // patch, W // patch
    Np = Hp * Wp
    p = x_nchw.reshape(B, C, Hp, patch, Wp, patch)
    p = p.transpose(0, 2, 4, 1, 3, 5).reshape(B, Np, C * patch * patch)

    S = Np + 1
    pe = jnp.pad(positional_encoding(S, D), ((0, 0), (0, Dp - D)))    # (S, Dp)
    cls_row = params["cls_token"] + pe[0:1]                           # (1, Dp)
    pe_patches = pe[1:]                                               # (Np, Dp)

    # Kernel 1: patch embed + BN + ReLU + PE add + cls concat -> (B, S, Dp) bf16
    x = patch_embed(p.astype(jnp.bfloat16), params["conv_w"],
                    params["bn_scale"], params["bn_bias"], pe_patches, cls_row)

    for layer_params in params["layers"]:
        x = transformer_block_apply(x, layer_params, n_head, D)
        # dropout is identity at inference

    return x[:, :, :D].astype(jnp.float32)


if __name__ == "__main__":
    # ViT(input_chanel=3, output_chanel=32, n_head=4, n_expansion=2, n_layer=2)
    # Conv kernel_size=stride=32 requires spatial >= 32; use 64x64 -> 4 patches.
    B, C, H, W = 2, 3, 64, 64
    D, n_head, n_expansion, n_layer, P = 32, 4, 2, 2, 32

    key = jax.random.PRNGKey(0)
    k_x, k_p = jax.random.split(key)
    x = jax.random.normal(k_x, (B, C, H, W), dtype=jnp.float32)
    params = init_params(k_p, C, D, n_head, n_expansion, n_layer, P)

    out = jax.block_until_ready(vit_forward(x, params, n_head=n_head, patch=P))
    assert out.shape == (B, (H // P) * (W // P) + 1, D)
    assert bool(jnp.all(jnp.isfinite(out)))
    print("KERNEL_OK")
</pallas_src>

<mosaic_0001>
module attributes {stable_mosaic.version = 11 : i64} {
  func.func @patch_embed_kernel(%arg0: i32, %arg1: memref<1x4x3072xbf16, #tpu.memory_space<vmem>>, %arg2: memref<3072x128xbf16, #tpu.memory_space<vmem>>, %arg3: memref<1x128xf32, #tpu.memory_space<vmem>>, %arg4: memref<1x128xf32, #tpu.memory_space<vmem>>, %arg5: memref<4x128xf32, #tpu.memory_space<vmem>>, %arg6: memref<1x128xf32, #tpu.memory_space<vmem>>, %arg7: memref<1x5x128xbf16, #tpu.memory_space<vmem>>) attributes {dimension_semantics = [#tpu.dimension_semantics<parallel>], iteration_bounds = array<i64: 2>, scalar_prefetch = 0 : i64, scratch_operands = 0 : i64, tpu.core_type = #tpu.core_type<tc>, window_params = [{transform_indices = @transform_0, window_bounds = array<i64: 1, 4, 3072>}, {pipeline_mode = #tpu.pipeline_mode<synchronous>, transform_indices = @transform_1, window_bounds = array<i64: 3072, 128>}, {pipeline_mode = #tpu.pipeline_mode<synchronous>, transform_indices = @transform_2, window_bounds = array<i64: 1, 128>}, {pipeline_mode = #tpu.pipeline_mode<synchronous>, transform_indices = @transform_3, window_bounds = array<i64: 1, 128>}, {pipeline_mode = #tpu.pipeline_mode<synchronous>, transform_indices = @transform_4, window_bounds = array<i64: 4, 128>}, {pipeline_mode = #tpu.pipeline_mode<synchronous>, transform_indices = @transform_5, window_bounds = array<i64: 1, 128>}, {transform_indices = @transform_6, window_bounds = array<i64: 1, 5, 128>}]} {
    %c0 = arith.constant 0 : index
    %c0_0 = arith.constant 0 : index
    %c0_1 = arith.constant 0 : index
    %0 = vector.load %arg1[%c0, %c0_0, %c0_1] : memref<1x4x3072xbf16, #tpu.memory_space<vmem>>, vector<1x4x3072xbf16>
    %1 = vector.shape_cast %0 : vector<1x4x3072xbf16> to vector<4x3072xbf16>
    %c0_2 = arith.constant 0 : index
    %c0_3 = arith.constant 0 : index
    %2 = vector.load %arg2[%c0_2, %c0_3] : memref<3072x128xbf16, #tpu.memory_space<vmem>>, vector<3072x128xbf16>
    %cst = arith.constant dense<0.000000e+00> : vector<4x128xf32>
    %3 = tpu.matmul %1, %2, %cst {dimension_numbers = #tpu.dot_dimension_numbers<[1], [0], [0], [1], [0, 0, 1, 1], [], []>} : vector<4x3072xbf16>, vector<3072x128xbf16>, vector<4x128xf32> -> vector<4x128xf32>
    %c0_4 = arith.constant 0 : index
    %c0_5 = arith.constant 0 : index
    %4 = vector.load %arg3[%c0_4, %c0_5] : memref<1x128xf32, #tpu.memory_space<vmem>>, vector<1x128xf32>
    %5 = vector.broadcast %4 : vector<1x128xf32> to vector<4x128xf32>
    %6 = arith.mulf %3, %5 : vector<4x128xf32>
    %c0_6 = arith.constant 0 : index
    %c0_7 = arith.constant 0 : index
    %7 = vector.load %arg4[%c0_6, %c0_7] : memref<1x128xf32, #tpu.memory_space<vmem>>, vector<1x128xf32>
    %8 = vector.broadcast %7 : vector<1x128xf32> to vector<4x128xf32>
    %9 = arith.addf %6, %8 : vector<4x128xf32>
    %cst_8 = arith.constant 0.000000e+00 : f32
    %10 = vector.broadcast %cst_8 : f32 to vector<4x128xf32>
    %11 = arith.maximumf %9, %10 : vector<4x128xf32>
    %12 = vector.shape_cast %11 : vector<4x128xf32> to vector<1x4x128xf32>
    %c0_9 = arith.constant 0 : index
    %c0_10 = arith.constant 0 : index
    %13 = vector.load %arg5[%c0_9, %c0_10] : memref<4x128xf32, #tpu.memory_space<vmem>>, vector<4x128xf32>
    %14 = vector.shape_cast %13 : vector<4x128xf32> to vector<1x4x128xf32>
    %15 = arith.addf %12, %14 : vector<1x4x128xf32>
    %c0_11 = arith.constant 0 : index
    %c0_12 = arith.constant 0 : index
    %16 = vector.load %arg6[%c0_11, %c0_12] : memref<1x128xf32, #tpu.memory_space<vmem>>, vector<1x128xf32>
    %17 = vector.shape_cast %16 : vector<1x128xf32> to vector<1x1x128xf32>
    %18 = tpu.concatenate %17, %15 in 1 : vector<1x1x128xf32>, vector<1x4x128xf32> -> vector<1x5x128xf32>
    %19 = arith.truncf %18 : vector<1x5x128xf32> to vector<1x5x128xbf16>
    %c0_13 = arith.constant 0 : index
    %c0_14 = arith.constant 0 : index
    %c0_15 = arith.constant 0 : index
    %20 = vector.load %arg7[%c0_13, %c0_14, %c0_15] : memref<1x5x128xbf16, #tpu.memory_space<vmem>>, vector<1x5x128xbf16>
    tpu.vector_store %arg7[%c0_13, %c0_14, %c0_15], %19 {strides = array<i32>} : memref<1x5x128xbf16, #tpu.memory_space<vmem>>, vector<1x5x128xbf16>,
    return
  }
  func.func @transform_0(%arg0: i32) -> (i32, i32, i32) {
    %c0_i32 = arith.constant 0 : i32
    %c0_i32_0 = arith.constant 0 : i32
    %c0_i32_1 = arith.constant 0 : i32
    return %arg0, %c0_i32, %c0_i32_0 : i32, i32, i32
  }
  func.func @transform_1(%arg0: i32) -> (i32, i32) {
    %c0_i32 = arith.constant 0 : i32
    %c0_i32_0 = arith.constant 0 : i32
    %c0_i32_1 = arith.constant 0 : i32
    return %c0_i32, %c0_i32_0 : i32, i32
  }
  func.func @transform_2(%arg0: i32) -> (i32, i32) {
    %c0_i32 = arith.constant 0 : i32
    %c0_i32_0 = arith.constant 0 : i32
    %c0_i32_1 = arith.constant 0 : i32
    return %c0_i32, %c0_i32_0 : i32, i32
  }
  func.func @transform_3(%arg0: i32) -> (i32, i32) {
    %c0_i32 = arith.constant 0 : i32
    %c0_i32_0 = arith.constant 0 : i32
    %c0_i32_1 = arith.constant 0 : i32
    return %c0_i32, %c0_i32_0 : i32, i32
  }
  func.func @transform_4(%arg0: i32) -> (i32, i32) {
    %c0_i32 = arith.constant 0 : i32
    %c0_i32_0 = arith.constant 0 : i32
    %c0_i32_1 = arith.constant 0 : i32
    return %c0_i32, %c0_i32_0 : i32, i32
  }
  func.func @transform_5(%arg0: i32) -> (i32, i32) {
    %c0_i32 = arith.constant 0 : i32
    %c0_i32_0 = arith.constant 0 : i32
    %c0_i32_1 = arith.constant 0 : i32
    return %c0_i32, %c0_i32_0 : i32, i32
  }
  func.func @transform_6(%arg0: i32) -> (i32, i32, i32) {
    %c0_i32 = arith.constant 0 : i32
    %c0_i32_0 = arith.constant 0 : i32
    %c0_i32_1 = arith.constant 0 : i32
    return %arg0, %c0_i32, %c0_i32_0 : i32, i32, i32
  }
}

</mosaic_0001>

<bundles_post_ra>
// kernel: tpu_custom_call.1
= control target key start
LH: loop header
LB: loop body
LE: loop exit
PB: predicated region body
PF: predicated region fallthrough
CT: control target
= control target key end

     0   :  { %11 = vsyncpa [#allocation3], 0  ;;  %s3578_s0 = inlined_call_operand.hbm [shape: bf16[2,4,3072], index: 0, kind: input, shape index: {}]   ;;  %s3579_s1 = inlined_call_operand.hbm [shape: bf16[3072,128], index: 1, kind: input, shape index: {}]   ;;  %s3580_s2 = inlined_call_operand.vmem [shape: f32[1,128], index: 2, kind: input, shape index: {}]   ;;  %s3581_s3 = inlined_call_operand.vmem [shape: f32[1,128], index: 3, kind: input, shape index: {}]   ;;  %s3582_s4 = inlined_call_operand.vmem [shape: f32[4,128], index: 4, kind: input, shape index: {}]   ;;  %s3583_s5 = inlined_call_operand.vmem [shape: f32[1,128], index: 5, kind: input, shape index: {}]   ;;  %s3584_s6 = inlined_call_operand.vmem [shape: bf16[2,5,128], index: 6, kind: output, shape index: {}]  }
   0x1   :  { %13 = vsyncpa [#allocation3 + $0x1], 0 }
   0x2   :  { %14 = vsyncpa [#allocation5], 0  ;;  %s3405_s21 = smov 0   ;;  %s3407_s22 = smov 0  }
   0x3   :  { %s3409_s23 = smov 0   ;;  %s3411_s24 = smov 0  }
   0x4 LB: > { %s3424_s25 = sadd.s32 4294967295, %s3363_s24   ;;  %p40_p0 = scmp.ne.s32.totalorder %s3355_s22, %s3351_s21  ;;  %s3363_s24 = sphi %s3411_s24, %s3599_s24   ;;  %s3359_s23 = sphi %s3409_s23, %s3598_s23   ;;  %s3355_s22 = sphi %s3407_s22, %s3597_s22   ;;  %s3351_s21 = sphi %s3405_s21, %s3596_s21  }
   0x5   : > { %p3585_p1 = scmp.eq.s32.totalorder %s3424_s25, 0  ;;  %p2546_p2 = scmp.ge.s32.totalorder %s3363_s24, 1 }
   0x6   : > { %p182_p3 = scmp.lt.s32.totalorder %s3363_s24, 3  ;;  %s3365_s28 = smov [#allocation4]  }
   0x7   : > { %p3432_p4 = por %p3585_p1, %p40_p0  ;;  %s194_s29 = sshll.u32 %s3365_s28, 4  ;;  %s195_s29 = int_to_ptr.vmem [resolvable:$true] %s194_s29 }
   0x8   : > { %p3436_p5 = pnand %p2546_p2, %p182_p3  ;;  %s3449_s7 = sadd.s32 1, %s3363_s24  }
   0x9   : > { %s3588_s26 = scalar_select %p3432_p4, 1, 0 }
   0xa   : > { %s3589_s27 = scalar_select %p3436_p5, 1, 0 }
   0xb   : > { %p3022_p6 = pneg %p3436_p5  ;;  %s27_s8 = sadd.s32 1, %s3359_s23 }
   0xc   : > { %s24_s9 = ssub.s32 %s3363_s24, %s3449_s7  ;;  %s3267_s12 = scalar_lea.hbm %s3579_s1, 24576 }
   0xd   : > { %p3444_p7 = pnand %p3022_p6, %p3585_p1  ;;  %p3268_p8 = scmp.ne.s32.totalorder %s3579_s1, %s3267_s12 }
   0xe   : > { %p3274_p12 = scmp.lt.u32.totalorder %s3267_s12, %s3579_s1 }
   0xf   : > { %p3269_p9 = pneg %p3444_p7 }
  0x11   : > { %p3270_p10 = pnand %p3269_p9, %p3268_p8 }
  0x13   : > { %p3271_p11 = pneg %p3270_p10 }
  0x15   : > { %p3276_p13 = pnand %p3274_p12, %p3271_p11 }
  0x17   : > { %3279 = shalt.err (!%p3276_p13)
}
  0x18   : > { %s3280_s17 = scalar_lea.vmem %s195_s29, 24576  ;;  %p3288_p6 = scmp.lt.s32.totalorder %s195_s29, %s195_s29 }
  0x19   : > { %p3281_p0 = scmp.ne.s32.totalorder %s195_s29, %s3280_s17  ;;  %p3289_p1 = scmp.lt.s32.totalorder %s3280_s17, %s3280_s17 }
  0x1b   : > { %p3283_p2 = pnand %p3281_p0, %p3269_p9  ;;  %p3290_p4 = por %p3289_p1, %p3288_p6 }
  0x1d   : > { %p3284_p3 = pneg %p3283_p2 }
  0x1f   : > { %p3291_p5 = pnand %p3290_p4, %p3284_p3 }
  0x21   : > { %3294 = shalt.err (!%p3291_p5)
}
  0x22   : > { %s3366_s18 = smov 64   ;;  %s3367_s19 = smov 4  }
  0x23   : > { %3025 = dma.hbm_to_vmem [thread:$0]  (!%p3444_p7), %s3579_s1, 24576, %s195_s29, [#allocation5], %s3366_s18, %s3366_s18, %s3367_s19  }
  0x24   : > { %p25_p8 = scmp.eq.s32.totalorder %s24_s9, 0  ;;  %p34_p9 = scmp.ne.s32.totalorder %s3359_s23, %s3355_s22 }
  0x25   : > { %p35_p1 = scmp.eq.s32.totalorder %s3363_s24, 0  ;;  %p3031_p4 = scmp.lt.s32.totalorder %s3363_s24, 2 }
  0x26   : > { %s3475_s28 = scalar_select %p25_p8, %s3359_s23, %s27_s8  }
  0x27   : > { %p36_p5 = por %p35_p1, %p34_p9  ;;  %s220_s10 = sand.u32 1, %s3359_s23  }
  0x28   : > { %s3013_s11 = smul.u32 48, %s220_s10  ;;  %s3300_s18 = scalar_lea.hbm %s3578_s0, 1536 }
  0x29   : > { %s3014_s12 = smul.u32 768, %s3363_s24  ;;  %p3479_p10 = pnand %p3031_p4, %p36_p5 }
  0x2a   : > { %s224_s8 = scalar_lea.vmem [#allocation2], %s3013_s11  ;;  %s221_s24 = scalar_lea.sflag [#allocation3], %s220_s10 }
  0x2b   : > { %s3486_s29 = scalar_lea.hbm %s3578_s0, %s3014_s12  ;;  %s232_s9 = sshll.u32 %s224_s8, 4  ;;  %s3488_s9 = int_to_ptr.vmem [resolvable:$true] %s232_s9 }
  0x2c   : > { %s3295_s15 = scalar_lea.hbm %s3486_s29, 768  ;;  %p3297_p11 = pneg %p3479_p10 }
  0x2d   : > { %p3296_p7 = scmp.ne.s32.totalorder %s3486_s29, %s3295_s15  ;;  %p3301_p0 = scmp.lt.u32.totalorder %s3486_s29, %s3578_s0 }
  0x2e   : > { %p3302_p2 = scmp.lt.u32.totalorder %s3300_s18, %s3295_s15  ;;  %p3304_p6 = scmp.lt.u32.totalorder %s3295_s15, %s3486_s29 }
  0x2f   : > { %p3298_p12 = pnand %p3297_p11, %p3296_p7 }
  0x30   : > { %p3303_p3 = por %p3302_p2, %p3301_p0 }
  0x31   : > { %p3299_p13 = pneg %p3298_p12 }
  0x32   : > { %p3305_p8 = por %p3304_p6, %p3303_p3 }
  0x34   : > { %p3306_p9 = pnand %p3305_p8, %p3299_p13 }
  0x36   : > { %3309 = shalt.err (!%p3306_p9)
}
  0x37   : > { %s3310_s21 = scalar_lea.vmem %s3488_s9, 768  ;;  %s3368_s10 = smov [#allocation2]  }
  0x38   : > { %p3311_p1 = scmp.ne.s32.totalorder %s3488_s9, %s3310_s21  ;;  %s3315_s11 = sshll.u32 %s3368_s10, 4  ;;  %s3316_s11 = int_to_ptr.vmem [resolvable:$false] %s3315_s11 }
  0x39   : > { %s3317_s12 = scalar_lea.vmem %s3316_s11, 1536  ;;  %p3318_p7 = scmp.lt.s32.totalorder %s3488_s9, %s3316_s11 }
  0x3a   : > { %p3313_p4 = pnand %p3311_p1, %p3297_p11  ;;  %p3319_p12 = scmp.lt.s32.totalorder %s3317_s12, %s3310_s21 }
  0x3c   : > { %p3314_p5 = pneg %p3313_p4  ;;  %p3320_p0 = por %p3319_p12, %p3318_p7 }
  0x3e   : > { %p3321_p2 = pnand %p3320_p0, %p3314_p5 }
  0x40   : > { %3324 = shalt.err (!%p3321_p2)
}
  0x41   : > { %3029 = dma.hbm_to_vmem [thread:$0]  (!%p3479_p10), %s3486_s29, 768, %s3488_s9, %s221_s24  }
  0x42   : > { %p3592_p13 = scmp.ne.s32.totalorder %s3589_s27, 0 }
  0x43   : > { %s243_s14 = sand.u32 (!%p3592_p13), 1, %s3355_s22   ;;  %p3593_p11 = scmp.ne.s32.totalorder (!%p3592_p13), %s3588_s26, 0 }
  0x44   : > { %241 = sbr.rel (%p3592_p13) target bundleno = 507 (0x1fb), region = 44  ;;  %s244_s8 = scalar_lea.sflag (!%p3592_p13), [#allocation3], %s243_s14 }
  0x45   : > { %s3015_s30 = smul.u32 (!%p3592_p13), 48, %s243_s14 }
  0x47   : > { %s3518_s15 = scalar_lea.vmem (!%p3592_p13), [#allocation2], %s3015_s30 }
  0x4b   : > { %3342 = dma.done.wait (%p3593_p11), %s244_s8, 768  }
  0x4c   : > { %3344 = vsyncadd (%p3593_p11), %s244_s8, 4294966528  ;;  %p3594_p3 = scmp.eq.s32.totalorder %s3424_s25, 0 }
  0x4e   : > { %3346 = dma.done.wait (%p3594_p3), [#allocation5], 24576   ;;  %p3595_p10 = pmov %p3594_p3 }
  0x4f   : > { %v3069_v0 = vld [vmem:[#allocation4 + $0x40] sm:$0xff]   ;;  %v3073_v4 = vld [vmem:[#allocation4 + $0x48] sm:$0xff]   ;;  %v3077_v8 = vld [vmem:[#allocation4 + $0x50] sm:$0xff]   ;;  %v3369_v22 = vmov 1983009808   ;;  %v684_v24 = vlaneseq  ;;  %p279_p6 = scmp.lt.s32.totalorder %s3424_s25, 1 }
  0x50   : > { %3348 = vsyncadd (%p3595_p10), [#allocation5], 4294942720  ;;  %v3070_v1 = vld [vmem:[#allocation4 + $0xc0] sm:$0xff]   ;;  %2749 = vmatprep.subr.bf16.mxu0 %v3069_v0  ;;  %v3074_v5 = vld [vmem:[#allocation4 + $0xc8] sm:$0xff]   ;;  %v682_v23 = vunpack.c.l.s4 %v3369_v22  ;;  %vm2461_vm0 = vcmask 1040384   ;;  %vm2464_vm1 = vcmask 1042432  }
  0x51   : > { %v3071_v2 = vld [vmem:[#allocation4] sm:$0xff]   ;;  %2771 = vmatprep.subr.bf16.mxu1 %v3070_v1  ;;  %v3075_v6 = vld [vmem:[#allocation4 + $0x8] sm:$0xff]   ;;  %v3078_v9 = vld [vmem:[#allocation4 + $0xd0] sm:$0xff]   ;;  %v685_v30 = vshrl.u32 %v684_v24, 7  ;;  %s3601_s25 = smov (!%p279_p6, %s3424_s25), 1 }
  0x52   : > { %v3072_v3 = vld [vmem:[#allocation4 + $0x80] sm:$0xff]   ;;  %2750 = vmatpush3.bf16.msra.mxu0 %v3071_v2  ;;  %v3076_v7 = vld [vmem:[#allocation4 + $0x88] sm:$0xff]   ;;  %v3079_v10 = vld [vmem:[#allocation4 + $0x10] sm:$0xff]   ;;  %v683_v29 = vunpack.c.0.s8 %v682_v23  ;;  %s2552_s16 = sshll.u32 %s3601_s25, 2  ;;  %vm2465_vm2 = vsmask.f32 2304 }
  0x53   : > { %2772 = vmatpush3.bf16.msra.mxu1 %v3072_v3  ;;  %2751 = vmatprep.subr.bf16.mxu0 %v3073_v4  ;;  %v3080_v11 = vld [vmem:[#allocation4 + $0x90] sm:$0xff]   ;;  %v3081_v12 = vld [vmem:[#allocation4 + $0x58] sm:$0xff]   ;;  %v3085_v16 = vld [vmem:[#allocation4 + $0x60] sm:$0xff]   ;;  %s282_s19 = scalar_lea.vmem %s3584_s6, %s2552_s16 }
  0x54   : > { %2773 = vmatprep.subr.bf16.mxu1 %v3074_v5  ;;  %v3082_v13 = vld [vmem:[#allocation4 + $0xd8] sm:$0xff]   ;;  %v3086_v17 = vld [vmem:[#allocation4 + $0xe0] sm:$0xff]   ;;  %v3089_v20 = vld [vmem:[#allocation4 + $0x68] sm:$0xff]   ;;  %v3528_v35 = vsub.s32 %v683_v29, %v685_v30 }
  0x55   : > { %v3083_v14 = vld [vmem:[#allocation4 + $0x18] sm:$0xff]   ;;  %v3087_v18 = vld [vmem:[#allocation4 + $0x20] sm:$0xff]   ;;  %v3090_v21 = vld [vmem:[#allocation4 + $0xe8] sm:$0xff]  }
  0x56   : > { %2752 = vmatpush3.bf16.msra.mxu0 %v3075_v6  ;;  %v3084_v15 = vld [vmem:[#allocation4 + $0x98] sm:$0xff]   ;;  %v3088_v19 = vld [vmem:[#allocation4 + $0xa0] sm:$0xff]   ;;  %v3091_v25 = vld [vmem:[#allocation4 + $0x28] sm:$0xff]  }
  0x57   : > { %2774 = vmatpush3.bf16.msra.mxu1 %v3076_v7  ;;  %2753 = vmatprep.subr.bf16.mxu0 %v3077_v8  ;;  %v3092_v26 = vld [vmem:[#allocation4 + $0xa8] sm:$0xff]   ;;  %v3093_v27 = vld [vmem:[#allocation4 + $0x70] sm:$0xff]   ;;  %v3097_v33 = vld [vmem:[#allocation4 + $0x78] sm:$0xff]  }
  0x58   : > { %2775 = vmatprep.subr.bf16.mxu1 %v3078_v9  ;;  %v3094_v28 = vld [vmem:[#allocation4 + $0xf0] sm:$0xff]   ;;  %v3098_v34 = vld [vmem:[#allocation4 + $0xf8] sm:$0xff]   ;;  %v3102_v41 = vld [vmem:[#allocation4 + $0x140] sm:$0xff]  }
  0x59   : > { %v3095_v31 = vld [vmem:[#allocation4 + $0x30] sm:$0xff]   ;;  %v3099_v36 = vld [vmem:[#allocation4 + $0x38] sm:$0xff]   ;;  %v3103_v42 = vld [vmem:[#allocation4 + $0x1c0] sm:$0xff]  }
  0x5a   : > { %2754 = vmatpush3.bf16.msra.mxu0 %v3079_v10  ;;  %v3096_v32 = vld [vmem:[#allocation4 + $0xb0] sm:$0xff]   ;;  %v3100_v37 = vld [vmem:[#allocation4 + $0xb8] sm:$0xff]   ;;  %v3104_v45 = vld [vmem:[#allocation4 + $0x100] sm:$0xff]  }
  0x5b   : > { %2776 = vmatpush3.bf16.msra.mxu1 %v3080_v11  ;;  %2755 = vmatprep.subr.bf16.mxu0 %v3081_v12  ;;  %v284_v38 = vld [vmem:[%s3518_s15] sm:$0xff]  ;;  %v3106_v48 = vld [vmem:[#allocation4 + $0x148] sm:$0xff]   ;;  %v3114_v56 = vld [vmem:[#allocation4 + $0x158] sm:$0xff]  }
  0x5c   : > { %2777 = vmatprep.subr.bf16.mxu1 %v3082_v13  ;;  %v687_v39 = vrot.slane %v284_v38, %v3528_v35  ;;  %v680_v40 = vcombine.high %v284_v38, %v284_v38  ;;  %v3105_v46 = vld [vmem:[#allocation4 + $0x180] sm:$0xff]   ;;  %v3107_v49 = vld [vmem:[#allocation4 + $0x1c8] sm:$0xff]   ;;  %v3110_v52 = vld [vmem:[#allocation4 + $0x150] sm:$0xff]  }
  0x5d   : > { %v3108_v50 = vld [vmem:[#allocation4 + $0x108] sm:$0xff]   ;;  %v3111_v53 = vld [vmem:[#allocation4 + $0x1d0] sm:$0xff]   ;;  %v3115_v57 = vld [vmem:[#allocation4 + $0x1d8] sm:$0xff]  }
  0x5e   : > { %2756 = vmatpush3.bf16.msra.mxu0 %v3083_v14  ;;  %v695_v43 = vcombine.high %v687_v39, %v687_v39  ;;  %v694_v44 = vrot.slane %v680_v40, %v3528_v35  ;;  %v3109_v51 = vld [vmem:[#allocation4 + $0x188] sm:$0xff]   ;;  %v3112_v54 = vld [vmem:[#allocation4 + $0x110] sm:$0xff]   ;;  %v3116_v58 = vld [vmem:[#allocation4 + $0x118] sm:$0xff]  }
  0x5f   : > { %2778 = vmatpush3.bf16.msra.mxu1 %v3084_v15  ;;  %2757 = vmatprep.subr.bf16.mxu0 %v3085_v16  ;;  %v3113_v55 = vld [vmem:[#allocation4 + $0x190] sm:$0xff]   ;;  %v3117_v59 = vld [vmem:[#allocation4 + $0x198] sm:$0xff]   ;;  %v3118_v60 = vld [vmem:[#allocation4 + $0x160] sm:$0xff]  }
  0x60   : > { %2779 = vmatprep.subr.bf16.mxu1 %v3086_v17  ;;  %1990 = vmatprep.mubr.bf16.mxu0 %v695_v43  ;;  %v696_v47 = vcombine.high %v694_v44, %v694_v44  ;;  %v3119_v61 = vld [vmem:[#allocation4 + $0x1e0] sm:$0xff]   ;;  %v3122_v0 = vld [vmem:[#allocation4 + $0x168] sm:$0xff]   ;;  %v3126_v4 = vld [vmem:[#allocation4 + $0x170] sm:$0xff]  }
  0x61   : > { %v3120_v62 = vld [vmem:[#allocation4 + $0x120] sm:$0xff]   ;;  %v3123_v1 = vld [vmem:[#allocation4 + $0x1e8] sm:$0xff]   ;;  %v3127_v5 = vld [vmem:[#allocation4 + $0x1f0] sm:$0xff]  }
  0x62   : > { %2758 = vmatpush3.bf16.msra.mxu0 %v3087_v18  ;;  %2030 = vmatprep.mubr.bf16.mxu1 %v696_v47  ;;  %v3121_v63 = vld [vmem:[#allocation4 + $0x1a0] sm:$0xff]   ;;  %v3124_v2 = vld [vmem:[#allocation4 + $0x128] sm:$0xff]   ;;  %v3128_v6 = vld [vmem:[#allocation4 + $0x130] sm:$0xff]  }
  0x63   : > { %2780 = vmatpush3.bf16.msra.mxu1 %v3088_v19  ;;  %2759 = vmatprep.subr.bf16.mxu0 %v3089_v20  ;;  %v3125_v3 = vld [vmem:[#allocation4 + $0x1a8] sm:$0xff]   ;;  %v3129_v7 = vld [vmem:[#allocation4 + $0x1b0] sm:$0xff]   ;;  %v3130_v8 = vld [vmem:[#allocation4 + $0x178] sm:$0xff]  }
  0x64   : > { %2781 = vmatprep.subr.bf16.mxu1 %v3090_v21  ;;  %v3131_v9 = vld [vmem:[#allocation4 + $0x1f8] sm:$0xff]   ;;  %v3135_v15 = vld [vmem:[#allocation4 + $0x240] sm:$0xff]   ;;  %v3139_v22 = vld [vmem:[#allocation4 + $0x248] sm:$0xff]  }
  0x65   : > { %v3132_v10 = vld [vmem:[#allocation4 + $0x138] sm:$0xff]   ;;  %v3136_v16 = vld [vmem:[#allocation4 + $0x2c0] sm:$0xff]   ;;  %v3140_v23 = vld [vmem:[#allocation4 + $0x2c8] sm:$0xff]  }
  0x66   : > { %2760 = vmatpush3.bf16.msra.mxu0 %v3091_v25  ;;  %v3133_v11 = vld [vmem:[#allocation4 + $0x1b8] sm:$0xff]   ;;  %v3137_v19 = vld [vmem:[#allocation4 + $0x200] sm:$0xff]   ;;  %v3141_v24 = vld [vmem:[#allocation4 + $0x208] sm:$0xff]  }
  0x67   : > { %2782 = vmatpush3.bf16.msra.mxu1 %v3092_v26  ;;  %2761 = vmatprep.subr.bf16.mxu0 %v3093_v27  ;;  %v285_v12 = vld [vmem:[%s3518_s15 + $0x8] sm:$0xff]  ;;  %v3138_v20 = vld [vmem:[#allocation4 + $0x280] sm:$0xff]   ;;  %v3143_v26 = vld [vmem:[#allocation4 + $0x250] sm:$0xff]  }
  0x68   : > { %2783 = vmatprep.subr.bf16.mxu1 %v3094_v28  ;;  %v704_v13 = vrot.slane %v285_v12, %v3528_v35  ;;  %v697_v14 = vcombine.high %v285_v12, %v285_v12  ;;  %v3142_v25 = vld [vmem:[#allocation4 + $0x288] sm:$0xff]   ;;  %v3144_v27 = vld [vmem:[#allocation4 + $0x2d0] sm:$0xff]   ;;  %v3147_v30 = vld [vmem:[#allocation4 + $0x258] sm:$0xff]  }
  0x69   : > { %v3145_v28 = vld [vmem:[#allocation4 + $0x210] sm:$0xff]   ;;  %v3154_v38 = vld [vmem:[#allocation4 + $0x2a0] sm:$0xff]   ;;  %v3156_v40 = vld [vmem:[#allocation4 + $0x2e8] sm:$0xff]  }
  0x6a   : > { %2762 = vmatpush3.bf16.msra.mxu0 %v3095_v31  ;;  %v712_v17 = vcombine.high %v704_v13, %v704_v13  ;;  %v711_v18 = vrot.slane %v697_v14, %v3528_v35  ;;  %v3146_v29 = vld [vmem:[#allocation4 + $0x290] sm:$0xff]   ;;  %v3148_v31 = vld [vmem:[#allocation4 + $0x2d8] sm:$0xff]   ;;  %v3187_v12 = vld [vmem:[#allocation4 + $0x3a0] sm:$0xff]  }
  0x6b   : > { %2784 = vmatpush3.bf16.msra.mxu1 %v3096_v32  ;;  %2763 = vmatprep.subr.bf16.mxu0 %v3097_v33  ;;  %v3149_v32 = vld [vmem:[#allocation4 + $0x218] sm:$0xff]   ;;  %v3159_v43 = vld [vmem:[#allocation4 + $0x270] sm:$0xff]   ;;  %v3189_v14 = vld [vmem:[#allocation4 + $0x3e8] sm:$0xff]  }
  0x6c   : > { %2785 = vmatprep.subr.bf16.mxu1 %v3098_v34  ;;  %v713_v21 = vcombine.high %v711_v18, %v711_v18  ;;  %v3150_v33 = vld [vmem:[#allocation4 + $0x298] sm:$0xff]   ;;  %v3151_v34 = vld [vmem:[#allocation4 + $0x260] sm:$0xff]   ;;  %vm2466_vm3 = vmand %vm2464_vm1, %vm2465_vm2 }
  0x6d   : > { %v3163_v47 = vld [vmem:[#allocation4 + $0x278] sm:$0xff]  }
  0x6e   : > { %2764 = vmatpush3.bf16.msra.mxu0 %v3099_v36  ;;  %v3152_v36 = vld [vmem:[#allocation4 + $0x2e0] sm:$0xff]  }
  0x6f   : > { %2786 = vmatpush3.bf16.msra.mxu1 %v3100_v37  ;;  %2793 = vmatprep.subr.bf16.mxu0 %v3102_v41  ;;  %v3153_v37 = vld [vmem:[#allocation4 + $0x220] sm:$0xff]   ;;  %v3157_v41 = vld [vmem:[#allocation4 + $0x228] sm:$0xff]  }
  0x70   : > { %2815 = vmatprep.subr.bf16.mxu1 %v3103_v42  ;;  %v3158_v42 = vld [vmem:[#allocation4 + $0x2a8] sm:$0xff]  }
  0x71   : > { %1991 = vmatmul.mubr.bf16.vlgmr.msra.gmra.mrb[0].mxu0 %v687_v39  ;;  %v3155_v39 = vld [vmem:[#allocation4 + $0x268] sm:$0xff]  }
  0x72   : > { %2794 = vmatpush3.bf16.msra.mxu0 %v3104_v45  ;;  %2031 = vmatmul.mubr.bf16.vlgmr.msra.gmra.mrb[0].mxu1 %v694_v44  ;;  %v3160_v44 = vld [vmem:[#allocation4 + $0x2f0] sm:$0xff]  }
  0x73   : > { %2795 = vmatprep.subr.bf16.mxu0 %v3106_v48  ;;  %2816 = vmatpush3.bf16.msra.mxu1 %v3105_v46  ;;  %v3161_v45 = vld [vmem:[#allocation4 + $0x230] sm:$0xff]   ;;  %v3164_v48 = vld [vmem:[#allocation4 + $0x2f8] sm:$0xff]  }
  0x74   : > { %2817 = vmatprep.subr.bf16.mxu1 %v3107_v49  ;;  %2070 = vmatprep.mubr.bf16.mxu0 %v712_v17  ;;  %v3162_v46 = vld [vmem:[#allocation4 + $0x2b0] sm:$0xff]   ;;  %v3165_v49 = vld [vmem:[#allocation4 + $0x238] sm:$0xff]  }
  0x75   : > { %2110 = vmatprep.mubr.bf16.mxu1 %v713_v21  ;;  %v3192_v17 = vld [vmem:[#allocation4 + $0x370] sm:$0xff]   ;;  %v3196_v21 = vld [vmem:[#allocation4 + $0x378] sm:$0xff]  }
  0x76   : > { %2796 = vmatpush3.bf16.msra.mxu0 %v3108_v50  ;;  %v3166_v50 = vld [vmem:[#allocation4 + $0x2b8] sm:$0xff]  }
  0x77   : > { %2797 = vmatprep.subr.bf16.mxu0 %v3110_v52  ;;  %2818 = vmatpush3.bf16.msra.mxu1 %v3109_v51  ;;  %v286_v51 = vld [vmem:[%s3518_s15 + $0x10] sm:$0xff] }
  0x78   : > { %2819 = vmatprep.subr.bf16.mxu1 %v3111_v53  ;;  %v721_v52 = vrot.slane %v286_v51, %v3528_v35  ;;  %v714_v53 = vcombine.high %v286_v51, %v286_v51  ;;  %v3220_v51 = vld [vmem:[#allocation4 + $0x4a0] sm:$0xff]  }
  0x7a   : > { %2798 = vmatpush3.bf16.msra.mxu0 %v3112_v54  ;;  %v3168_v54 = vld [vmem:[#allocation4 + $0x340] sm:$0xff]  }
  0x7b   : > { %2799 = vmatprep.subr.bf16.mxu0 %v3114_v56  ;;  %2820 = vmatpush3.bf16.msra.mxu1 %v3113_v55  ;;  %v3169_v55 = vld [vmem:[#allocation4 + $0x3c0] sm:$0xff]   ;;  %v729_v56 = vcombine.high %v721_v52, %v721_v52 }
  0x7c   : > { %2821 = vmatprep.subr.bf16.mxu1 %v3115_v57  ;;  %v728_v57 = vrot.slane %v714_v53, %v3528_v35  ;;  %v3222_v53 = vld [vmem:[#allocation4 + $0x4e8] sm:$0xff]  }
  0x7e   : > { %2800 = vmatpush3.bf16.msra.mxu0 %v3116_v58  ;;  %v3170_v58 = vld [vmem:[#allocation4 + $0x300] sm:$0xff]  }
  0x7f   : > { %2801 = vmatprep.subr.bf16.mxu0 %v3118_v60  ;;  %2822 = vmatpush3.bf16.msra.mxu1 %v3117_v59  ;;  %v3171_v59 = vld [vmem:[#allocation4 + $0x380] sm:$0xff]   ;;  %v730_v60 = vcombine.high %v728_v57, %v728_v57 }
  0x80   : > { %2823 = vmatprep.subr.bf16.mxu1 %v3119_v61  ;;  %v3172_v61 = vld [vmem:[#allocation4 + $0x348] sm:$0xff]  }
  0x82   : > { %2802 = vmatpush3.bf16.msra.mxu0 %v3120_v62  ;;  %v3173_v62 = vld [vmem:[#allocation4 + $0x3c8] sm:$0xff]  }
  0x83   : > { %2803 = vmatprep.subr.bf16.mxu0 %v3122_v0  ;;  %2824 = vmatpush3.bf16.msra.mxu1 %v3121_v63  ;;  %v3174_v63 = vld [vmem:[#allocation4 + $0x308] sm:$0xff]  }
  0x84   : > { %2825 = vmatprep.subr.bf16.mxu1 %v3123_v1  ;;  %v3175_v0 = vld [vmem:[#allocation4 + $0x388] sm:$0xff]   ;;  %v3176_v1 = vld [vmem:[#allocation4 + $0x350] sm:$0xff]  }
  0x86   : > { %2804 = vmatpush3.bf16.msra.mxu0 %v3124_v2  ;;  %v3177_v2 = vld [vmem:[#allocation4 + $0x3d0] sm:$0xff]  }
  0x87   : > { %2805 = vmatprep.subr.bf16.mxu0 %v3126_v4  ;;  %2826 = vmatpush3.bf16.msra.mxu1 %v3125_v3  ;;  %v3178_v3 = vld [vmem:[#allocation4 + $0x310] sm:$0xff]  }
  0x88   : > { %2827 = vmatprep.subr.bf16.mxu1 %v3127_v5  ;;  %v3179_v4 = vld [vmem:[#allocation4 + $0x390] sm:$0xff]   ;;  %v3180_v5 = vld [vmem:[#allocation4 + $0x358] sm:$0xff]  }
  0x8a   : > { %2806 = vmatpush3.bf16.msra.mxu0 %v3128_v6  ;;  %v3181_v6 = vld [vmem:[#allocation4 + $0x3d8] sm:$0xff]  }
  0x8b   : > { %2807 = vmatprep.subr.bf16.mxu0 %v3130_v8  ;;  %2828 = vmatpush3.bf16.msra.mxu1 %v3129_v7  ;;  %v3182_v7 = vld [vmem:[#allocation4 + $0x318] sm:$0xff]  }
  0x8c   : > { %2829 = vmatprep.subr.bf16.mxu1 %v3131_v9  ;;  %v3183_v8 = vld [vmem:[#allocation4 + $0x398] sm:$0xff]   ;;  %v3184_v9 = vld [vmem:[#allocation4 + $0x360] sm:$0xff]  }
  0x8e   : > { %2808 = vmatpush3.bf16.msra.mxu0 %v3132_v10  ;;  %v3185_v10 = vld [vmem:[#allocation4 + $0x3e0] sm:$0xff]  }
  0x8f   : > { %2837 = vmatprep.subr.bf16.mxu0 %v3135_v15  ;;  %2830 = vmatpush3.bf16.msra.mxu1 %v3133_v11  ;;  %v3186_v11 = vld [vmem:[#allocation4 + $0x320] sm:$0xff]   ;;  %v3190_v15 = vld [vmem:[#allocation4 + $0x328] sm:$0xff]  }
  0x90   : > { %2859 = vmatprep.subr.bf16.mxu1 %v3136_v16  ;;  %v3191_v16 = vld [vmem:[#allocation4 + $0x3a8] sm:$0xff]  }
  0x91   : > { %2071 = vmatmul.mubr.bf16.vlgmr.msra.gmra.mrb[4].mxu0 %v704_v13  ;;  %v3188_v13 = vld [vmem:[#allocation4 + $0x368] sm:$0xff]  }
  0x92   : > { %2838 = vmatpush3.bf16.msra.mxu0 %v3137_v19  ;;  %2111 = vmatmul.mubr.bf16.vlgmr.msra.gmra.mrb[4].mxu1 %v711_v18  ;;  %v3193_v18 = vld [vmem:[#allocation4 + $0x3f0] sm:$0xff]  }
  0x93   : > { %2839 = vmatprep.subr.bf16.mxu0 %v3139_v22  ;;  %2860 = vmatpush3.bf16.msra.mxu1 %v3138_v20  ;;  %v3194_v19 = vld [vmem:[#allocation4 + $0x330] sm:$0xff]   ;;  %v3197_v22 = vld [vmem:[#allocation4 + $0x3f8] sm:$0xff]  }
  0x94   : > { %2861 = vmatprep.subr.bf16.mxu1 %v3140_v23  ;;  %2150 = vmatprep.mubr.bf16.mxu0 %v729_v56  ;;  %v3195_v20 = vld [vmem:[#allocation4 + $0x3b0] sm:$0xff]   ;;  %v3198_v23 = vld [vmem:[#allocation4 + $0x338] sm:$0xff]  }
  0x95   : > { %2190 = vmatprep.mubr.bf16.mxu1 %v730_v60  ;;  %v3225_v56 = vld [vmem:[#allocation4 + $0x470] sm:$0xff]   ;;  %v3229_v60 = vld [vmem:[#allocation4 + $0x478] sm:$0xff]  }
  0x96   : > { %2840 = vmatpush3.bf16.msra.mxu0 %v3141_v24  ;;  %v3199_v24 = vld [vmem:[#allocation4 + $0x3b8] sm:$0xff]  }
  0x97   : > { %2841 = vmatprep.subr.bf16.mxu0 %v3143_v26  ;;  %2862 = vmatpush3.bf16.msra.mxu1 %v3142_v25  ;;  %v287_v25 = vld [vmem:[%s3518_s15 + $0x18] sm:$0xff] }
  0x98   : > { %2863 = vmatprep.subr.bf16.mxu1 %v3144_v27  ;;  %v738_v26 = vrot.slane %v287_v25, %v3528_v35  ;;  %v731_v27 = vcombine.high %v287_v25, %v287_v25  ;;  %v3253_v25 = vld [vmem:[#allocation4 + $0x5a0] sm:$0xff]  }
  0x9a   : > { %2842 = vmatpush3.bf16.msra.mxu0 %v3145_v28  ;;  %v3201_v28 = vld [vmem:[#allocation4 + $0x440] sm:$0xff]  }
  0x9b   : > { %2843 = vmatprep.subr.bf16.mxu0 %v3147_v30  ;;  %2864 = vmatpush3.bf16.msra.mxu1 %v3146_v29  ;;  %v3202_v29 = vld [vmem:[#allocation4 + $0x4c0] sm:$0xff]   ;;  %v746_v30 = vcombine.high %v738_v26, %v738_v26 }
  0x9c   : > { %2865 = vmatprep.subr.bf16.mxu1 %v3148_v31  ;;  %v745_v31 = vrot.slane %v731_v27, %v3528_v35  ;;  %v3255_v27 = vld [vmem:[#allocation4 + $0x5e8] sm:$0xff]  }
  0x9e   : > { %2844 = vmatpush3.bf16.msra.mxu0 %v3149_v32  ;;  %v3203_v32 = vld [vmem:[#allocation4 + $0x400] sm:$0xff]  }
  0x9f   : > { %2845 = vmatprep.subr.bf16.mxu0 %v3151_v34  ;;  %2866 = vmatpush3.bf16.msra.mxu1 %v3150_v33  ;;  %v3204_v33 = vld [vmem:[#allocation4 + $0x480] sm:$0xff]   ;;  %v747_v34 = vcombine.high %v745_v31, %v745_v31 }
  0xa0   : > { %2867 = vmatprep.subr.bf16.mxu1 %v3152_v36  ;;  %v3205_v36 = vld [vmem:[#allocation4 + $0x448] sm:$0xff]  }
  0xa2   : > { %2846 = vmatpush3.bf16.msra.mxu0 %v3153_v37  ;;  %v3206_v37 = vld [vmem:[#allocation4 + $0x4c8] sm:$0xff]  }
  0xa3   : > { %2847 = vmatprep.subr.bf16.mxu0 %v3155_v39  ;;  %2868 = vmatpush3.bf16.msra.mxu1 %v3154_v38  ;;  %v3207_v38 = vld [vmem:[#allocation4 + $0x408] sm:$0xff]  }
  0xa4   : > { %2869 = vmatprep.subr.bf16.mxu1 %v3156_v40  ;;  %v3208_v39 = vld [vmem:[#allocation4 + $0x488] sm:$0xff]   ;;  %v3209_v40 = vld [vmem:[#allocation4 + $0x450] sm:$0xff]  }
  0xa6   : > { %2848 = vmatpush3.bf16.msra.mxu0 %v3157_v41  ;;  %v3210_v41 = vld [vmem:[#allocation4 + $0x4d0] sm:$0xff]  }
  0xa7   : > { %2849 = vmatprep.subr.bf16.mxu0 %v3159_v43  ;;  %2870 = vmatpush3.bf16.msra.mxu1 %v3158_v42  ;;  %v3211_v42 = vld [vmem:[#allocation4 + $0x410] sm:$0xff]  }
  0xa8   : > { %2871 = vmatprep.subr.bf16.mxu1 %v3160_v44  ;;  %v3212_v43 = vld [vmem:[#allocation4 + $0x490] sm:$0xff]   ;;  %v3213_v44 = vld [vmem:[#allocation4 + $0x458] sm:$0xff]  }
  0xaa   : > { %2850 = vmatpush3.bf16.msra.mxu0 %v3161_v45  ;;  %v3214_v45 = vld [vmem:[#allocation4 + $0x4d8] sm:$0xff]  }
  0xab   : > { %2851 = vmatprep.subr.bf16.mxu0 %v3163_v47  ;;  %2872 = vmatpush3.bf16.msra.mxu1 %v3162_v46  ;;  %v3215_v46 = vld [vmem:[#allocation4 + $0x418] sm:$0xff]  }
  0xac   : > { %2873 = vmatprep.subr.bf16.mxu1 %v3164_v48  ;;  %v3216_v47 = vld [vmem:[#allocation4 + $0x498] sm:$0xff]   ;;  %v3217_v48 = vld [vmem:[#allocation4 + $0x460] sm:$0xff]  }
  0xae   : > { %2852 = vmatpush3.bf16.msra.mxu0 %v3165_v49  ;;  %v3218_v49 = vld [vmem:[#allocation4 + $0x4e0] sm:$0xff]  }
  0xaf   : > { %2881 = vmatprep.subr.bf16.mxu0 %v3168_v54  ;;  %2874 = vmatpush3.bf16.msra.mxu1 %v3166_v50  ;;  %v3219_v50 = vld [vmem:[#allocation4 + $0x420] sm:$0xff]   ;;  %v3223_v54 = vld [vmem:[#allocation4 + $0x428] sm:$0xff]  }
  0xb0   : > { %2903 = vmatprep.subr.bf16.mxu1 %v3169_v55  ;;  %v3224_v55 = vld [vmem:[#allocation4 + $0x4a8] sm:$0xff]  }
  0xb1   : > { %2151 = vmatmul.mubr.bf16.vlgmr.msra.gmra.mrb[8].mxu0 %v721_v52  ;;  %v3221_v52 = vld [vmem:[#allocation4 + $0x468] sm:$0xff]  }
  0xb2   : > { %2882 = vmatpush3.bf16.msra.mxu0 %v3170_v58  ;;  %2191 = vmatmul.mubr.bf16.vlgmr.msra.gmra.mrb[8].mxu1 %v728_v57  ;;  %v3226_v57 = vld [vmem:[#allocation4 + $0x4f0] sm:$0xff]  }
  0xb3   : > { %2883 = vmatprep.subr.bf16.mxu0 %v3172_v61  ;;  %2904 = vmatpush3.bf16.msra.mxu1 %v3171_v59  ;;  %v3227_v58 = vld [vmem:[#allocation4 + $0x430] sm:$0xff]   ;;  %v3230_v61 = vld [vmem:[#allocation4 + $0x4f8] sm:$0xff]  }
  0xb4   : > { %2905 = vmatprep.subr.bf16.mxu1 %v3173_v62  ;;  %2230 = vmatprep.mubr.bf16.mxu0 %v746_v30  ;;  %v3228_v59 = vld [vmem:[#allocation4 + $0x4b0] sm:$0xff]   ;;  %v3231_v62 = vld [vmem:[#allocation4 + $0x438] sm:$0xff]  }
  0xb5   : > { %2270 = vmatprep.mubr.bf16.mxu1 %v747_v34  ;;  %v3258_v30 = vld [vmem:[#allocation4 + $0x570] sm:$0xff]   ;;  %v3262_v34 = vld [vmem:[#allocation4 + $0x578] sm:$0xff]  }
  0xb6   : > { %2884 = vmatpush3.bf16.msra.mxu0 %v3174_v63  ;;  %v3232_v63 = vld [vmem:[#allocation4 + $0x4b8] sm:$0xff]  }
  0xb7   : > { %2885 = vmatprep.subr.bf16.mxu0 %v3176_v1  ;;  %2906 = vmatpush3.bf16.msra.mxu1 %v3175_v0  ;;  %v288_v0 = vld [vmem:[%s3518_s15 + $0x20] sm:$0xff] }
  0xb8   : > { %2907 = vmatprep.subr.bf16.mxu1 %v3177_v2  ;;  %v755_v1 = vrot.slane %v288_v0, %v3528_v35  ;;  %v748_v2 = vcombine.high %v288_v0, %v288_v0 }
  0xba   : > { %2886 = vmatpush3.bf16.msra.mxu0 %v3178_v3  ;;  %v3234_v3 = vld [vmem:[#allocation4 + $0x540] sm:$0xff]  }
  0xbb   : > { %2887 = vmatprep.subr.bf16.mxu0 %v3180_v5  ;;  %2908 = vmatpush3.bf16.msra.mxu1 %v3179_v4  ;;  %v3235_v4 = vld [vmem:[#allocation4 + $0x5c0] sm:$0xff]   ;;  %v763_v5 = vcombine.high %v755_v1, %v755_v1 }
  0xbc   : > { %2909 = vmatprep.subr.bf16.mxu1 %v3181_v6  ;;  %v762_v6 = vrot.slane %v748_v2, %v3528_v35 }
  0xbe   : > { %2888 = vmatpush3.bf16.msra.mxu0 %v3182_v7  ;;  %v3236_v7 = vld [vmem:[#allocation4 + $0x500] sm:$0xff]  }
  0xbf   : > { %2889 = vmatprep.subr.bf16.mxu0 %v3184_v9  ;;  %2910 = vmatpush3.bf16.msra.mxu1 %v3183_v8  ;;  %v3237_v8 = vld [vmem:[#allocation4 + $0x580] sm:$0xff]   ;;  %v764_v9 = vcombine.high %v762_v6, %v762_v6 }
  0xc0   : > { %2911 = vmatprep.subr.bf16.mxu1 %v3185_v10  ;;  %v3238_v10 = vld [vmem:[#allocation4 + $0x548] sm:$0xff]  }
  0xc2   : > { %2890 = vmatpush3.bf16.msra.mxu0 %v3186_v11  ;;  %v3239_v11 = vld [vmem:[#allocation4 + $0x5c8] sm:$0xff]  }
  0xc3   : > { %2891 = vmatprep.subr.bf16.mxu0 %v3188_v13  ;;  %2912 = vmatpush3.bf16.msra.mxu1 %v3187_v12  ;;  %v3240_v12 = vld [vmem:[#allocation4 + $0x508] sm:$0xff]  }
  0xc4   : > { %2913 = vmatprep.subr.bf16.mxu1 %v3189_v14  ;;  %v3241_v13 = vld [vmem:[#allocation4 + $0x588] sm:$0xff]   ;;  %v3242_v14 = vld [vmem:[#allocation4 + $0x550] sm:$0xff]  }
  0xc6   : > { %2892 = vmatpush3.bf16.msra.mxu0 %v3190_v15  ;;  %v3243_v15 = vld [vmem:[#allocation4 + $0x5d0] sm:$0xff]  }
  0xc7   : > { %2893 = vmatprep.subr.bf16.mxu0 %v3192_v17  ;;  %2914 = vmatpush3.bf16.msra.mxu1 %v3191_v16  ;;  %v3244_v16 = vld [vmem:[#allocation4 + $0x510] sm:$0xff]  }
  0xc8   : > { %2915 = vmatprep.subr.bf16.mxu1 %v3193_v18  ;;  %v3245_v17 = vld [vmem:[#allocation4 + $0x590] sm:$0xff]   ;;  %v3246_v18 = vld [vmem:[#allocation4 + $0x558] sm:$0xff]  }
  0xca   : > { %2894 = vmatpush3.bf16.msra.mxu0 %v3194_v19  ;;  %v3247_v19 = vld [vmem:[#allocation4 + $0x5d8] sm:$0xff]  }
  0xcb   : > { %2895 = vmatprep.subr.bf16.mxu0 %v3196_v21  ;;  %2916 = vmatpush3.bf16.msra.mxu1 %v3195_v20  ;;  %v3248_v20 = vld [vmem:[#allocation4 + $0x518] sm:$0xff]  }
  0xcc   : > { %2917 = vmatprep.subr.bf16.mxu1 %v3197_v22  ;;  %v3249_v21 = vld [vmem:[#allocation4 + $0x598] sm:$0xff]   ;;  %v3250_v22 = vld [vmem:[#allocation4 + $0x560] sm:$0xff]  }
  0xce   : > { %2896 = vmatpush3.bf16.msra.mxu0 %v3198_v23  ;;  %v3251_v23 = vld [vmem:[#allocation4 + $0x5e0] sm:$0xff]  }
  0xcf   : > { %2925 = vmatprep.subr.bf16.mxu0 %v3201_v28  ;;  %2918 = vmatpush3.bf16.msra.mxu1 %v3199_v24  ;;  %v3252_v24 = vld [vmem:[#allocation4 + $0x520] sm:$0xff]   ;;  %v3256_v28 = vld [vmem:[#allocation4 + $0x528] sm:$0xff]  }
  0xd0   : > { %2947 = vmatprep.subr.bf16.mxu1 %v3202_v29  ;;  %v3257_v29 = vld [vmem:[#allocation4 + $0x5a8] sm:$0xff]  }
  0xd1   : > { %2231 = vmatmul.mubr.bf16.vlgmr.msra.gmra.mrb[12].mxu0 %v738_v26  ;;  %v3254_v26 = vld [vmem:[#allocation4 + $0x568] sm:$0xff]  }
  0xd2   : > { %2926 = vmatpush3.bf16.msra.mxu0 %v3203_v32  ;;  %2271 = vmatmul.mubr.bf16.vlgmr.msra.gmra.mrb[12].mxu1 %v745_v31  ;;  %v3259_v31 = vld [vmem:[#allocation4 + $0x5f0] sm:$0xff]  }
  0xd3   : > { %2927 = vmatprep.subr.bf16.mxu0 %v3205_v36  ;;  %2948 = vmatpush3.bf16.msra.mxu1 %v3204_v33  ;;  %v3260_v32 = vld [vmem:[#allocation4 + $0x530] sm:$0xff]   ;;  %v3263_v36 = vld [vmem:[#allocation4 + $0x5f8] sm:$0xff]  }
  0xd4   : > { %2949 = vmatprep.subr.bf16.mxu1 %v3206_v37  ;;  %2310 = vmatprep.mubr.bf16.mxu0 %v763_v5  ;;  %v3261_v33 = vld [vmem:[#allocation4 + $0x5b0] sm:$0xff]   ;;  %v3264_v37 = vld [vmem:[#allocation4 + $0x538] sm:$0xff]  }
  0xd5   : > { %2350 = vmatprep.mubr.bf16.mxu1 %v764_v9 }
  0xd6   : > { %2928 = vmatpush3.bf16.msra.mxu0 %v3207_v38  ;;  %v289_v38 = vld [vmem:[%s3518_s15 + $0x28] sm:$0xff] }
  0xd7   : > { %2929 = vmatprep.subr.bf16.mxu0 %v3209_v40  ;;  %2950 = vmatpush3.bf16.msra.mxu1 %v3208_v39  ;;  %v3265_v39 = vld [vmem:[#allocation4 + $0x5b8] sm:$0xff]   ;;  %v772_v40 = vrot.slane %v289_v38, %v3528_v35 }
  0xd8   : > { %2951 = vmatprep.subr.bf16.mxu1 %v3210_v41  ;;  %v765_v41 = vcombine.high %v289_v38, %v289_v38 }
  0xda   : > { %2930 = vmatpush3.bf16.msra.mxu0 %v3211_v42  ;;  %v780_v42 = vcombine.high %v772_v40, %v772_v40 }
  0xdb   : > { %2931 = vmatprep.subr.bf16.mxu0 %v3213_v44  ;;  %2952 = vmatpush3.bf16.msra.mxu1 %v3212_v43  ;;  %v779_v43 = vrot.slane %v765_v41, %v3528_v35 }
  0xdc   : > { %2953 = vmatprep.subr.bf16.mxu1 %v3214_v45 }
  0xdd   : > { %v781_v44 = vcombine.high %v779_v43, %v779_v43 }
  0xde   : > { %2932 = vmatpush3.bf16.msra.mxu0 %v3215_v46 }
  0xdf   : > { %2933 = vmatprep.subr.bf16.mxu0 %v3217_v48  ;;  %2954 = vmatpush3.bf16.msra.mxu1 %v3216_v47 }
  0xe0   : > { %2955 = vmatprep.subr.bf16.mxu1 %v3218_v49 }
  0xe2   : > { %2934 = vmatpush3.bf16.msra.mxu0 %v3219_v50 }
  0xe3   : > { %2935 = vmatprep.subr.bf16.mxu0 %v3221_v52  ;;  %2956 = vmatpush3.bf16.msra.mxu1 %v3220_v51 }
  0xe4   : > { %2957 = vmatprep.subr.bf16.mxu1 %v3222_v53 }
  0xe6   : > { %2936 = vmatpush3.bf16.msra.mxu0 %v3223_v54 }
  0xe7   : > { %2937 = vmatprep.subr.bf16.mxu0 %v3225_v56  ;;  %2958 = vmatpush3.bf16.msra.mxu1 %v3224_v55 }
  0xe8   : > { %2959 = vmatprep.subr.bf16.mxu1 %v3226_v57 }
  0xea   : > { %2938 = vmatpush3.bf16.msra.mxu0 %v3227_v58 }
  0xeb   : > { %2939 = vmatprep.subr.bf16.mxu0 %v3229_v60  ;;  %2960 = vmatpush3.bf16.msra.mxu1 %v3228_v59 }
  0xec   : > { %2961 = vmatprep.subr.bf16.mxu1 %v3230_v61 }
  0xee   : > { %2940 = vmatpush3.bf16.msra.mxu0 %v3231_v62 }
  0xef   : > { %2969 = vmatprep.subr.bf16.mxu0 %v3234_v3  ;;  %2962 = vmatpush3.bf16.msra.mxu1 %v3232_v63 }
  0xf0   : > { %2991 = vmatprep.subr.bf16.mxu1 %v3235_v4 }
  0xf1   : > { %2311 = vmatmul.mubr.bf16.vlgmr.msra.gmra.mrb[16].mxu0 %v755_v1 }
  0xf2   : > { %2970 = vmatpush3.bf16.msra.mxu0 %v3236_v7  ;;  %2351 = vmatmul.mubr.bf16.vlgmr.msra.gmra.mrb[16].mxu1 %v762_v6 }
  0xf3   : > { %2971 = vmatprep.subr.bf16.mxu0 %v3238_v10  ;;  %2992 = vmatpush3.bf16.msra.mxu1 %v3237_v8 }
  0xf4   : > { %2993 = vmatprep.subr.bf16.mxu1 %v3239_v11  ;;  %2390 = vmatprep.mubr.bf16.mxu0 %v780_v42 }
  0xf5   : > { %2430 = vmatprep.mubr.bf16.mxu1 %v781_v44 }
  0xf6   : > { %2972 = vmatpush3.bf16.msra.mxu0 %v3240_v12 }
  0xf7   : > { %2973 = vmatprep.subr.bf16.mxu0 %v3242_v14  ;;  %2994 = vmatpush3.bf16.msra.mxu1 %v3241_v13 }
  0xf8   : > { %2995 = vmatprep.subr.bf16.mxu1 %v3243_v15 }
  0xfa   : > { %2974 = vmatpush3.bf16.msra.mxu0 %v3244_v16 }
  0xfb   : > { %2975 = vmatprep.subr.bf16.mxu0 %v3246_v18  ;;  %2996 = vmatpush3.bf16.msra.mxu1 %v3245_v17 }
  0xfc   : > { %2997 = vmatprep.subr.bf16.mxu1 %v3247_v19 }
  0xfe   : > { %2976 = vmatpush3.bf16.msra.mxu0 %v3248_v20 }
  0xff   : > { %2977 = vmatprep.subr.bf16.mxu0 %v3250_v22  ;;  %2998 = vmatpush3.bf16.msra.mxu1 %v3249_v21 }
 0x100   : > { %2999 = vmatprep.subr.bf16.mxu1 %v3251_v23 }
 0x102   : > { %2978 = vmatpush3.bf16.msra.mxu0 %v3252_v24 }
 0x103   : > { %2979 = vmatprep.subr.bf16.mxu0 %v3254_v26  ;;  %3000 = vmatpush3.bf16.msra.mxu1 %v3253_v25 }
 0x104   : > { %3001 = vmatprep.subr.bf16.mxu1 %v3255_v27 }
 0x106   : > { %2980 = vmatpush3.bf16.msra.mxu0 %v3256_v28 }
 0x107   : > { %2981 = vmatprep.subr.bf16.mxu0 %v3258_v30  ;;  %3002 = vmatpush3.bf16.msra.mxu1 %v3257_v29 }
 0x108   : > { %3003 = vmatprep.subr.bf16.mxu1 %v3259_v31 }
 0x10a   : > { %2982 = vmatpush3.bf16.msra.mxu0 %v3260_v32 }
 0x10b   : > { %2983 = vmatprep.subr.bf16.mxu0 %v3262_v34  ;;  %3004 = vmatpush3.bf16.msra.mxu1 %v3261_v33 }
 0x10c   : > { %3005 = vmatprep.subr.bf16.mxu1 %v3263_v36 }
 0x10e   : > { %2984 = vmatpush3.bf16.msra.mxu0 %v3264_v37 }
 0x10f   : > { %3006 = vmatpush3.bf16.msra.mxu1 %v3265_v39 }
 0x111   : > { %2391 = vmatmul.mubr.bf16.vlgmr.msra.gmra.mrb[20].mxu0 %v772_v40 }
 0x112   : > { %2431 = vmatmul.mubr.bf16.vlgmr.msra.gmra.mrb[20].mxu1 %v779_v43 }
 0x144   : > { %v2765_v45 = vpop.f32.mrb[0].mxu0 }
 0x145   : > { %v2766_v46 = vpop.f32.mrb[1].mxu0  ;;  %v2787_v47 = vpop.f32.mrb[0].mxu1 }
 0x146   : > { %v2767_v48 = vadd.f32 %v2766_v46, %v2765_v45  ;;  %v2768_v49 = vpop.f32.mrb[2].mxu0  ;;  %v2788_v50 = vpop.f32.mrb[1].mxu1 }
 0x147   : > { %v2769_v51 = vpop.f32.mrb[3].mxu0  ;;  %v2789_v52 = vadd.f32 %v2788_v50, %v2787_v47  ;;  %v2790_v53 = vpop.f32.mrb[2].mxu1  ;;  %v2745_v50 = vld [vmem:[%s3580_s2] ss:$0 sm:$0xff] }
 0x148   : > { %v2791_v54 = vpop.f32.mrb[3].mxu1  ;;  %v2746_v53 = vld [vmem:[%s3581_s3] ss:$0 sm:$0xff] }
 0x149   : > { %v2033_v55 = vadd.f32 %v2789_v52, %v2767_v48 }
 0x164   : > { %v2809_v56 = vpop.f32.mrb[4].mxu0 }
 0x165   : > { %v2810_v57 = vpop.f32.mrb[5].mxu0  ;;  %v2831_v35 = vpop.f32.mrb[4].mxu1 }
 0x166   : > { %v2811_v58 = vadd.f32 %v2810_v57, %v2809_v56  ;;  %v2812_v59 = vpop.f32.mrb[6].mxu0  ;;  %v2832_v60 = vpop.f32.mrb[5].mxu1  ;;  %v2455_v56 = vld [vmem:[%s3582_s4] sm:$0xf] }
 0x167   : > { %v2813_v61 = vpop.f32.mrb[7].mxu0  ;;  %v2833_v63 = vadd.f32 %v2832_v60, %v2831_v35  ;;  %v2834_v0 = vpop.f32.mrb[6].mxu1 }
 0x168   : > { %v2073_v62 = vadd.f32 %v2811_v58, %v2033_v55  ;;  %v2835_v1 = vpop.f32.mrb[7].mxu1  ;;  %v2457_v58 = vld [vmem:[%s3583_s5] sm:$0x1] }
 0x169   : > { %v2467_v61 = vld [vmem:[%s282_s19] sm:$0x7] }
 0x16a   : > { %v2113_v2 = vadd.f32 %v2833_v63, %v2073_v62 }
 0x184   : > { %v2853_v3 = vpop.f32.mrb[8].mxu0 }
 0x185   : > { %v2854_v4 = vpop.f32.mrb[9].mxu0  ;;  %v2875_v5 = vpop.f32.mrb[8].mxu1 }
 0x186   : > { %v2855_v6 = vadd.f32 %v2854_v4, %v2853_v3  ;;  %v2856_v7 = vpop.f32.mrb[10].mxu0  ;;  %v2876_v8 = vpop.f32.mrb[9].mxu1 }
 0x187   : > { %v2857_v9 = vpop.f32.mrb[11].mxu0  ;;  %v2877_v11 = vadd.f32 %v2876_v8, %v2875_v5  ;;  %v2878_v12 = vpop.f32.mrb[10].mxu1 }
 0x188   : > { %v2153_v10 = vadd.f32 %v2855_v6, %v2113_v2  ;;  %v2879_v13 = vpop.f32.mrb[11].mxu1 }
 0x18a   : > { %v2193_v14 = vadd.f32 %v2877_v11, %v2153_v10 }
 0x1a4   : > { %v2897_v15 = vpop.f32.mrb[12].mxu0 }
 0x1a5   : > { %v2898_v16 = vpop.f32.mrb[13].mxu0  ;;  %v2919_v17 = vpop.f32.mrb[12].mxu1 }
 0x1a6   : > { %v2899_v18 = vadd.f32 %v2898_v16, %v2897_v15  ;;  %v2900_v19 = vpop.f32.mrb[14].mxu0  ;;  %v2920_v20 = vpop.f32.mrb[13].mxu1 }
 0x1a7   : > { %v2901_v21 = vpop.f32.mrb[15].mxu0  ;;  %v2921_v23 = vadd.f32 %v2920_v20, %v2919_v17  ;;  %v2922_v24 = vpop.f32.mrb[14].mxu1 }
 0x1a8   : > { %v2233_v22 = vadd.f32 %v2899_v18, %v2193_v14  ;;  %v2923_v25 = vpop.f32.mrb[15].mxu1 }
 0x1aa   : > { %v2273_v26 = vadd.f32 %v2921_v23, %v2233_v22 }
 0x1c4   : > { %v2941_v27 = vpop.f32.mrb[16].mxu0 }
 0x1c5   : > { %v2942_v28 = vpop.f32.mrb[17].mxu0  ;;  %v2963_v29 = vpop.f32.mrb[16].mxu1 }
 0x1c6   : > { %v2943_v30 = vadd.f32 %v2942_v28, %v2941_v27  ;;  %v2944_v31 = vpop.f32.mrb[18].mxu0  ;;  %v2964_v32 = vpop.f32.mrb[17].mxu1 }
 0x1c7   : > { %v2945_v33 = vpop.f32.mrb[19].mxu0  ;;  %v2965_v36 = vadd.f32 %v2964_v32, %v2963_v29  ;;  %v2966_v37 = vpop.f32.mrb[18].mxu1 }
 0x1c8   : > { %v2313_v34 = vadd.f32 %v2943_v30, %v2273_v26  ;;  %v2967_v38 = vpop.f32.mrb[19].mxu1 }
 0x1ca   : > { %v2353_v39 = vadd.f32 %v2965_v36, %v2313_v34 }
 0x1e4   : > { %v2985_v40 = vpop.f32.mrb[20].mxu0 }
 0x1e5   : > { %v2986_v41 = vpop.f32.mrb[21].mxu0  ;;  %v3007_v42 = vpop.f32.mrb[20].mxu1 }
 0x1e6   : > { %v2987_v43 = vadd.f32 %v2986_v41, %v2985_v40  ;;  %v2988_v44 = vpop.f32.mrb[22].mxu0  ;;  %v3008_v45 = vpop.f32.mrb[21].mxu1 }
 0x1e7   : > { %v2989_v46 = vpop.f32.mrb[23].mxu0  ;;  %v3009_v48 = vadd.f32 %v3008_v45, %v3007_v42  ;;  %v3010_v49 = vpop.f32.mrb[22].mxu1 }
 0x1e8   : > { %v2393_v47 = vadd.f32 %v2987_v43, %v2353_v39  ;;  %v3011_v51 = vpop.f32.mrb[23].mxu1 }
 0x1ea   : > { %v2433_v52 = vadd.f32 %v3009_v48, %v2393_v47 }
 0x1ec   : > { %v2445_v54 = vmul.f32 %v2745_v50, %v2433_v52 }
 0x1ee   : > { %v2453_v55 = vadd.f32 %v2746_v53, %v2445_v54 }
 0x1f0   : > { %v2454_v57 = vmax.f32 %v2453_v55, 0.0 }
 0x1f2   : > { %v2456_v35 = vadd.f32 %v2455_v56, %v2454_v57 }
 0x1f4   : > { %v2459_v59 = vrot.slane %v2456_v35, 7 }
 0x1f6   : > { %v2462_v60 = vsel %vm2461_vm0, %v2457_v58, %v2459_v59 }
 0x1f7   : > { %v2463_v62 = vpack.c.bf16 %v2462_v60, %v2462_v60 }
 0x1f9   : > { %v2468_v63 = vsel %vm2466_vm3, %v2463_v62, %v2467_v61 }
 0x1fa   : > { %2469 = vst [vmem:[%s282_s19] sm:$0x7] %v2468_v63 }
 0x1fb PF: > { %p17_p8 = scmp.ge.s32.totalorder %s3449_s7, 4   ;;  %s3596_s21 = smov %s3355_s22 }
 0x1fc   : > { %s3597_s22 = smov %s3359_s23  ;;  %s3598_s23 = smov %s3475_s28 }
 0x1fd   : > { %s3599_s24 = smov %s3449_s7  ;;  %19 = sbr.rel (!%p17_p8) target bundleno = 4 (0x4), region = 88 }
 0x204   :  { %2489 = vsyncpa [#allocation3], 1 }
 0x205   :  { %2491 = vsyncpa [#allocation3 + $0x1], 1 }
 0x206   :  { %2492 = vsyncpa [#allocation5], 1 }

</bundles_post_ra>
